<compile_context>
chip_gen: v5e
topology: v5e:2x2
jax: 0.10.0
libtpu: 0.0.40
codegen_flags: <defaults>
</compile_context>

<pallas_src>
import math
import functools

import jax
import jax.numpy as jnp
import numpy as np
from jax.experimental import pallas as pl
from jax.experimental.pallas import tpu as pltpu


# ---------------------------------------------------------------------------
# Fused cross-attention kernel (one batch element per grid step)
# ---------------------------------------------------------------------------

def _cross_attn_kernel(x_ref, enc_ref, wq_ref, bq_ref, wkv_ref, bkv_ref,
                       wp_ref, bp_ref, y_ref, att_ref, *, n_head, scale):
    x = x_ref[0]          # (T, C)
    enc = enc_ref[0]      # (T_E, D_cond)
    c = x.shape[-1]
    hd = c // n_head

    # Q projection and fused K/V projection (single matmul each).
    q = jnp.dot(x, wq_ref[...], preferred_element_type=jnp.float32) + bq_ref[...]
    kv = jnp.dot(enc, wkv_ref[...], preferred_element_type=jnp.float32) + bkv_ref[...]
    k = kv[:, :c]         # (T_E, C)
    v = kv[:, c:]         # (T_E, C)

    # Per-head attention (static loop; all intermediates stay in vregs/VMEM).
    y_heads = []
    att_sum = None
    for h in range(n_head):
        qh = q[:, h * hd:(h + 1) * hd]                       # (T, hd)
        kh = k[:, h * hd:(h + 1) * hd]                       # (T_E, hd)
        vh = v[:, h * hd:(h + 1) * hd]                       # (T_E, hd)
        s = jax.lax.dot_general(
            qh, kh, (((1,), (1,)), ((), ())),
            preferred_element_type=jnp.float32) * scale       # (T, T_E)
        m = jnp.max(s, axis=-1, keepdims=True)
        e = jnp.exp(s - m)
        inv_l = pl.reciprocal(jnp.sum(e, axis=-1, keepdims=True), approx=True)
        p = e * inv_l                                         # softmax probs
        att_sum = p if att_sum is None else att_sum + p
        y_heads.append(jnp.dot(p, vh, preferred_element_type=jnp.float32))

    # Merge heads (lane-contiguous (T, C) slab) and apply the output projection.
    y = jnp.concatenate(y_heads, axis=-1)                     # (T, C)
    y = jnp.dot(y, wp_ref[...], preferred_element_type=jnp.float32) + bp_ref[...]

    y_ref[0] = y
    att_ref[0] = att_sum * (1.0 / n_head)                     # mean over heads


def cross_attention(x, enc, wq, bq, wk, bk, wv, bv, wp, bp, *, n_head):
    """x: (B, T, C) f32, enc: (B, T_E, D_cond) f32.
    Weights are stored transposed relative to PyTorch, i.e. (in, out).
    Returns (y: (B, T, C), att_mean: (B, T, T_E))."""
    b, t, c = x.shape
    t_e, d = enc.shape[1], enc.shape[2]
    hd = c // n_head
    scale = 1.0 / math.sqrt(hd)

    # Fuse K and V projections into one (D_cond, 2C) matmul.
    wkv = jnp.concatenate([wk, wv], axis=1).astype(jnp.float32)          # (D, 2C)
    bkv = jnp.concatenate([bk, bv], axis=0).reshape(1, 2 * c).astype(jnp.float32)
    bq2 = bq.reshape(1, c).astype(jnp.float32)
    bp2 = bp.reshape(1, c).astype(jnp.float32)

    kern = functools.partial(_cross_attn_kernel, n_head=n_head, scale=scale)
    return pl.pallas_call(
        kern,
        out_shape=(jax.ShapeDtypeStruct((b, t, c), jnp.float32),
                   jax.ShapeDtypeStruct((b, t, t_e), jnp.float32)),
        grid=(b,),
        in_specs=[
            pl.BlockSpec((1, t, c), lambda i: (i, 0, 0)),     # x
            pl.BlockSpec((1, t_e, d), lambda i: (i, 0, 0)),   # encoder_output
            pl.BlockSpec((c, c), lambda i: (0, 0)),           # wq
            pl.BlockSpec((1, c), lambda i: (0, 0)),           # bq
            pl.BlockSpec((d, 2 * c), lambda i: (0, 0)),       # wkv (fused)
            pl.BlockSpec((1, 2 * c), lambda i: (0, 0)),       # bkv (fused)
            pl.BlockSpec((c, c), lambda i: (0, 0)),           # wp
            pl.BlockSpec((1, c), lambda i: (0, 0)),           # bp
        ],
        out_specs=[
            pl.BlockSpec((1, t, c), lambda i: (i, 0, 0)),     # y
            pl.BlockSpec((1, t, t_e), lambda i: (i, 0, 0)),   # att mean over heads
        ],
        compiler_params=pltpu.CompilerParams(
            dimension_semantics=("parallel",)),
    )(x.astype(jnp.float32), enc.astype(jnp.float32),
      wq.astype(jnp.float32), bq2, wkv, bkv, wp.astype(jnp.float32), bp2)


# ---------------------------------------------------------------------------
# Pure-JAX reference (mirrors the PyTorch forward, dropout = identity)
# ---------------------------------------------------------------------------

def reference(x, enc, wq, bq, wk, bk, wv, bv, wp, bp, *, n_head):
    b, t, c = x.shape
    t_e = enc.shape[1]
    hd = c // n_head
    q = (x @ wq + bq).reshape(b, t, n_head, hd).transpose(0, 2, 1, 3)
    k = (enc @ wk + bk).reshape(b, t_e, n_head, hd).transpose(0, 2, 1, 3)
    v = (enc @ wv + bv).reshape(b, t_e, n_head, hd).transpose(0, 2, 1, 3)
    att = jnp.einsum("bhqd,bhkd->bhqk", q, k) * (1.0 / math.sqrt(hd))
    att = jax.nn.softmax(att, axis=-1)
    y = jnp.einsum("bhqk,bhkd->bhqd", att, v)
    y = y.transpose(0, 2, 1, 3).reshape(b, t, c)
    y = y @ wp + bp
    return y, att.mean(axis=1)


# ---------------------------------------------------------------------------
# Main
# ---------------------------------------------------------------------------

if __name__ == "__main__":
    B, T, T_E = 2, 16, 8
    n_embd, condition_embd, n_head = 32, 64, 4

    key = jax.random.PRNGKey(0)
    ks = jax.random.split(key, 12)

    def lin_init(kw, kb, fan_in, fan_out):
        bound = 1.0 / math.sqrt(fan_in)
        w = jax.random.uniform(kw, (fan_in, fan_out), jnp.float32, -bound, bound)
        b_ = jax.random.uniform(kb, (fan_out,), jnp.float32, -bound, bound)
        return w, b_

    wq, bq = lin_init(ks[0], ks[1], n_embd, n_embd)
    wk, bk = lin_init(ks[2], ks[3], condition_embd, n_embd)
    wv, bv = lin_init(ks[4], ks[5], condition_embd, n_embd)
    wp, bp = lin_init(ks[6], ks[7], n_embd, n_embd)

    x = jax.random.normal(ks[8], (B, T, n_embd), jnp.float32)
    enc = jax.random.normal(ks[9], (B, T_E, condition_embd), jnp.float32)

    fwd = jax.jit(functools.partial(cross_attention, n_head=n_head))
    y, att = fwd(x, enc, wq, bq, wk, bk, wv, bv, wp, bp)
    jax.block_until_ready((y, att))

    y_ref, att_ref = reference(x, enc, wq, bq, wk, bk, wv, bv, wp, bp,
                               n_head=n_head)

    assert y.shape == (B, T, n_embd)
    assert att.shape == (B, T, T_E)
    assert bool(jnp.all(jnp.isfinite(y))) and bool(jnp.all(jnp.isfinite(att)))
    # approx reciprocal in the softmax -> compare with a modest tolerance.
    assert np.allclose(np.asarray(y), np.asarray(y_ref), rtol=5e-2, atol=5e-2)
    assert np.allclose(np.asarray(att), np.asarray(att_ref), rtol=5e-2, atol=5e-2)
    print("KERNEL_OK")
</pallas_src>

<mosaic_0001>
module attributes {stable_mosaic.version = 11 : i64} {
  func.func @_cross_attn_kernel(%arg0: i32, %arg1: memref<1x16x32xf32, #tpu.memory_space<vmem>>, %arg2: memref<1x8x64xf32, #tpu.memory_space<vmem>>, %arg3: memref<32x32xf32, #tpu.memory_space<vmem>>, %arg4: memref<1x32xf32, #tpu.memory_space<vmem>>, %arg5: memref<64x64xf32, #tpu.memory_space<vmem>>, %arg6: memref<1x64xf32, #tpu.memory_space<vmem>>, %arg7: memref<32x32xf32, #tpu.memory_space<vmem>>, %arg8: memref<1x32xf32, #tpu.memory_space<vmem>>, %arg9: memref<1x16x32xf32, #tpu.memory_space<vmem>>, %arg10: memref<1x16x8xf32, #tpu.memory_space<vmem>>) attributes {dimension_semantics = [#tpu.dimension_semantics<parallel>], iteration_bounds = array<i64: 2>, scalar_prefetch = 0 : i64, scratch_operands = 0 : i64, tpu.core_type = #tpu.core_type<tc>, window_params = [{transform_indices = @transform_0, window_bounds = array<i64: 1, 16, 32>}, {transform_indices = @transform_1, window_bounds = array<i64: 1, 8, 64>}, {pipeline_mode = #tpu.pipeline_mode<synchronous>, transform_indices = @transform_2, window_bounds = array<i64: 32, 32>}, {pipeline_mode = #tpu.pipeline_mode<synchronous>, transform_indices = @transform_3, window_bounds = array<i64: 1, 32>}, {pipeline_mode = #tpu.pipeline_mode<synchronous>, transform_indices = @transform_4, window_bounds = array<i64: 64, 64>}, {pipeline_mode = #tpu.pipeline_mode<synchronous>, transform_indices = @transform_5, window_bounds = array<i64: 1, 64>}, {pipeline_mode = #tpu.pipeline_mode<synchronous>, transform_indices = @transform_6, window_bounds = array<i64: 32, 32>}, {pipeline_mode = #tpu.pipeline_mode<synchronous>, transform_indices = @transform_7, window_bounds = array<i64: 1, 32>}, {transform_indices = @transform_8, window_bounds = array<i64: 1, 16, 32>}, {transform_indices = @transform_9, window_bounds = array<i64: 1, 16, 8>}]} {
    %c0 = arith.constant 0 : index
    %c0_0 = arith.constant 0 : index
    %c0_1 = arith.constant 0 : index
    %0 = vector.load %arg1[%c0, %c0_0, %c0_1] : memref<1x16x32xf32, #tpu.memory_space<vmem>>, vector<1x16x32xf32>
    %1 = vector.shape_cast %0 : vector<1x16x32xf32> to vector<16x32xf32>
    %c0_2 = arith.constant 0 : index
    %c0_3 = arith.constant 0 : index
    %c0_4 = arith.constant 0 : index
    %2 = vector.load %arg2[%c0_2, %c0_3, %c0_4] : memref<1x8x64xf32, #tpu.memory_space<vmem>>, vector<1x8x64xf32>
    %3 = vector.shape_cast %2 : vector<1x8x64xf32> to vector<8x64xf32>
    %c0_5 = arith.constant 0 : index
    %c0_6 = arith.constant 0 : index
    %4 = vector.load %arg3[%c0_5, %c0_6] : memref<32x32xf32, #tpu.memory_space<vmem>>, vector<32x32xf32>
    %cst = arith.constant dense<0.000000e+00> : vector<16x32xf32>
    %5 = tpu.matmul %1, %4, %cst {dimension_numbers = #tpu.dot_dimension_numbers<[1], [0], [0], [1], [0, 0, 1, 1], [], []>} : vector<16x32xf32>, vector<32x32xf32>, vector<16x32xf32> -> vector<16x32xf32>
    %c0_7 = arith.constant 0 : index
    %c0_8 = arith.constant 0 : index
    %6 = vector.load %arg4[%c0_7, %c0_8] : memref<1x32xf32, #tpu.memory_space<vmem>>, vector<1x32xf32>
    %7 = vector.broadcast %6 : vector<1x32xf32> to vector<16x32xf32>
    %8 = arith.addf %5, %7 : vector<16x32xf32>
    %c0_9 = arith.constant 0 : index
    %c0_10 = arith.constant 0 : index
    %9 = vector.load %arg5[%c0_9, %c0_10] : memref<64x64xf32, #tpu.memory_space<vmem>>, vector<64x64xf32>
    %cst_11 = arith.constant dense<0.000000e+00> : vector<8x64xf32>
    %10 = tpu.matmul %3, %9, %cst_11 {dimension_numbers = #tpu.dot_dimension_numbers<[1], [0], [0], [1], [0, 0, 1, 1], [], []>} : vector<8x64xf32>, vector<64x64xf32>, vector<8x64xf32> -> vector<8x64xf32>
    %c0_12 = arith.constant 0 : index
    %c0_13 = arith.constant 0 : index
    %11 = vector.load %arg6[%c0_12, %c0_13] : memref<1x64xf32, #tpu.memory_space<vmem>>, vector<1x64xf32>
    %12 = vector.broadcast %11 : vector<1x64xf32> to vector<8x64xf32>
    %13 = arith.addf %10, %12 : vector<8x64xf32>
    %14 = vector.extract_strided_slice %13 {offsets = [0, 0], sizes = [8, 32], strides = [1, 1]} : vector<8x64xf32> to vector<8x32xf32>
    %15 = vector.extract_strided_slice %13 {offsets = [0, 32], sizes = [8, 32], strides = [1, 1]} : vector<8x64xf32> to vector<8x32xf32>
    %16 = vector.extract_strided_slice %8 {offsets = [0, 0], sizes = [16, 8], strides = [1, 1]} : vector<16x32xf32> to vector<16x8xf32>
    %17 = vector.extract_strided_slice %14 {offsets = [0, 0], sizes = [8, 8], strides = [1, 1]} : vector<8x32xf32> to vector<8x8xf32>
    %18 = vector.extract_strided_slice %15 {offsets = [0, 0], sizes = [8, 8], strides = [1, 1]} : vector<8x32xf32> to vector<8x8xf32>
    %cst_14 = arith.constant dense<0.000000e+00> : vector<16x8xf32>
    %19 = tpu.matmul %16, %17, %cst_14 {dimension_numbers = #tpu.dot_dimension_numbers<[1], [1], [0], [0], [0, 0, 1, 0], [], []>} : vector<16x8xf32>, vector<8x8xf32>, vector<16x8xf32> -> vector<16x8xf32>
    %cst_15 = arith.constant 0.353553385 : f32
    %20 = vector.broadcast %cst_15 : f32 to vector<16x8xf32>
    %21 = arith.mulf %19, %20 : vector<16x8xf32>
    %cst_16 = arith.constant dense<0xFF800000> : vector<16xf32>
    %22 = vector.multi_reduction <maximumf>, %21, %cst_16 [1] : vector<16x8xf32> to vector<16xf32>
    %23 = vector.shape_cast %22 : vector<16xf32> to vector<16x1xf32>
    %24 = vector.broadcast %23 : vector<16x1xf32> to vector<16x8xf32>
    %25 = arith.subf %21, %24 : vector<16x8xf32>
    %26 = math.exp %25 : vector<16x8xf32>
    %cst_17 = arith.constant dense<0.000000e+00> : vector<16xf32>
    %27 = vector.multi_reduction <add>, %26, %cst_17 [1] : vector<16x8xf32> to vector<16xf32>
    %28 = vector.shape_cast %27 : vector<16xf32> to vector<16x1xf32>
    %29 = tpu.reciprocal %28 {approx = true} : vector<16x1xf32> -> vector<16x1xf32>
    %30 = vector.broadcast %29 : vector<16x1xf32> to vector<16x8xf32>
    %31 = arith.mulf %26, %30 : vector<16x8xf32>
    %cst_18 = arith.constant dense<0.000000e+00> : vector<16x8xf32>
    %32 = tpu.matmul %31, %18, %cst_18 {dimension_numbers = #tpu.dot_dimension_numbers<[1], [0], [0], [1], [0, 0, 1, 1], [], []>} : vector<16x8xf32>, vector<8x8xf32>, vector<16x8xf32> -> vector<16x8xf32>
    %33 = vector.extract_strided_slice %8 {offsets = [0, 8], sizes = [16, 8], strides = [1, 1]} : vector<16x32xf32> to vector<16x8xf32>
    %34 = vector.extract_strided_slice %14 {offsets = [0, 8], sizes = [8, 8], strides = [1, 1]} : vector<8x32xf32> to vector<8x8xf32>
    %35 = vector.extract_strided_slice %15 {offsets = [0, 8], sizes = [8, 8], strides = [1, 1]} : vector<8x32xf32> to vector<8x8xf32>
    %cst_19 = arith.constant dense<0.000000e+00> : vector<16x8xf32>
    %36 = tpu.matmul %33, %34, %cst_19 {dimension_numbers = #tpu.dot_dimension_numbers<[1], [1], [0], [0], [0, 0, 1, 0], [], []>} : vector<16x8xf32>, vector<8x8xf32>, vector<16x8xf32> -> vector<16x8xf32>
    %cst_20 = arith.constant 0.353553385 : f32
    %37 = vector.broadcast %cst_20 : f32 to vector<16x8xf32>
    %38 = arith.mulf %36, %37 : vector<16x8xf32>
    %cst_21 = arith.constant dense<0xFF800000> : vector<16xf32>
    %39 = vector.multi_reduction <maximumf>, %38, %cst_21 [1] : vector<16x8xf32> to vector<16xf32>
    %40 = vector.shape_cast %39 : vector<16xf32> to vector<16x1xf32>
    %41 = vector.broadcast %40 : vector<16x1xf32> to vector<16x8xf32>
    %42 = arith.subf %38, %41 : vector<16x8xf32>
    %43 = math.exp %42 : vector<16x8xf32>
    %cst_22 = arith.constant dense<0.000000e+00> : vector<16xf32>
    %44 = vector.multi_reduction <add>, %43, %cst_22 [1] : vector<16x8xf32> to vector<16xf32>
    %45 = vector.shape_cast %44 : vector<16xf32> to vector<16x1xf32>
    %46 = tpu.reciprocal %45 {approx = true} : vector<16x1xf32> -> vector<16x1xf32>
    %47 = vector.broadcast %46 : vector<16x1xf32> to vector<16x8xf32>
    %48 = arith.mulf %43, %47 : vector<16x8xf32>
    %49 = arith.addf %31, %48 : vector<16x8xf32>
    %cst_23 = arith.constant dense<0.000000e+00> : vector<16x8xf32>
    %50 = tpu.matmul %48, %35, %cst_23 {dimension_numbers = #tpu.dot_dimension_numbers<[1], [0], [0], [1], [0, 0, 1, 1], [], []>} : vector<16x8xf32>, vector<8x8xf32>, vector<16x8xf32> -> vector<16x8xf32>
    %51 = vector.extract_strided_slice %8 {offsets = [0, 16], sizes = [16, 8], strides = [1, 1]} : vector<16x32xf32> to vector<16x8xf32>
    %52 = vector.extract_strided_slice %14 {offsets = [0, 16], sizes = [8, 8], strides = [1, 1]} : vector<8x32xf32> to vector<8x8xf32>
    %53 = vector.extract_strided_slice %15 {offsets = [0, 16], sizes = [8, 8], strides = [1, 1]} : vector<8x32xf32> to vector<8x8xf32>
    %cst_24 = arith.constant dense<0.000000e+00> : vector<16x8xf32>
    %54 = tpu.matmul %51, %52, %cst_24 {dimension_numbers = #tpu.dot_dimension_numbers<[1], [1], [0], [0], [0, 0, 1, 0], [], []>} : vector<16x8xf32>, vector<8x8xf32>, vector<16x8xf32> -> vector<16x8xf32>
    %cst_25 = arith.constant 0.353553385 : f32
    %55 = vector.broadcast %cst_25 : f32 to vector<16x8xf32>
    %56 = arith.mulf %54, %55 : vector<16x8xf32>
    %cst_26 = arith.constant dense<0xFF800000> : vector<16xf32>
    %57 = vector.multi_reduction <maximumf>, %56, %cst_26 [1] : vector<16x8xf32> to vector<16xf32>
    %58 = vector.shape_cast %57 : vector<16xf32> to vector<16x1xf32>
    %59 = vector.broadcast %58 : vector<16x1xf32> to vector<16x8xf32>
    %60 = arith.subf %56, %59 : vector<16x8xf32>
    %61 = math.exp %60 : vector<16x8xf32>
    %cst_27 = arith.constant dense<0.000000e+00> : vector<16xf32>
    %62 = vector.multi_reduction <add>, %61, %cst_27 [1] : vector<16x8xf32> to vector<16xf32>
    %63 = vector.shape_cast %62 : vector<16xf32> to vector<16x1xf32>
    %64 = tpu.reciprocal %63 {approx = true} : vector<16x1xf32> -> vector<16x1xf32>
    %65 = vector.broadcast %64 : vector<16x1xf32> to vector<16x8xf32>
    %66 = arith.mulf %61, %65 : vector<16x8xf32>
    %67 = arith.addf %49, %66 : vector<16x8xf32>
    %cst_28 = arith.constant dense<0.000000e+00> : vector<16x8xf32>
    %68 = tpu.matmul %66, %53, %cst_28 {dimension_numbers = #tpu.dot_dimension_numbers<[1], [0], [0], [1], [0, 0, 1, 1], [], []>} : vector<16x8xf32>, vector<8x8xf32>, vector<16x8xf32> -> vector<16x8xf32>
    %69 = vector.extract_strided_slice %8 {offsets = [0, 24], sizes = [16, 8], strides = [1, 1]} : vector<16x32xf32> to vector<16x8xf32>
    %70 = vector.extract_strided_slice %14 {offsets = [0, 24], sizes = [8, 8], strides = [1, 1]} : vector<8x32xf32> to vector<8x8xf32>
    %71 = vector.extract_strided_slice %15 {offsets = [0, 24], sizes = [8, 8], strides = [1, 1]} : vector<8x32xf32> to vector<8x8xf32>
    %cst_29 = arith.constant dense<0.000000e+00> : vector<16x8xf32>
    %72 = tpu.matmul %69, %70, %cst_29 {dimension_numbers = #tpu.dot_dimension_numbers<[1], [1], [0], [0], [0, 0, 1, 0], [], []>} : vector<16x8xf32>, vector<8x8xf32>, vector<16x8xf32> -> vector<16x8xf32>
    %cst_30 = arith.constant 0.353553385 : f32
    %73 = vector.broadcast %cst_30 : f32 to vector<16x8xf32>
    %74 = arith.mulf %72, %73 : vector<16x8xf32>
    %cst_31 = arith.constant dense<0xFF800000> : vector<16xf32>
    %75 = vector.multi_reduction <maximumf>, %74, %cst_31 [1] : vector<16x8xf32> to vector<16xf32>
    %76 = vector.shape_cast %75 : vector<16xf32> to vector<16x1xf32>
    %77 = vector.broadcast %76 : vector<16x1xf32> to vector<16x8xf32>
    %78 = arith.subf %74, %77 : vector<16x8xf32>
    %79 = math.exp %78 : vector<16x8xf32>
    %cst_32 = arith.constant dense<0.000000e+00> : vector<16xf32>
    %80 = vector.multi_reduction <add>, %79, %cst_32 [1] : vector<16x8xf32> to vector<16xf32>
    %81 = vector.shape_cast %80 : vector<16xf32> to vector<16x1xf32>
    %82 = tpu.reciprocal %81 {approx = true} : vector<16x1xf32> -> vector<16x1xf32>
    %83 = vector.broadcast %82 : vector<16x1xf32> to vector<16x8xf32>
    %84 = arith.mulf %79, %83 : vector<16x8xf32>
    %85 = arith.addf %67, %84 : vector<16x8xf32>
    %cst_33 = arith.constant dense<0.000000e+00> : vector<16x8xf32>
    %86 = tpu.matmul %84, %71, %cst_33 {dimension_numbers = #tpu.dot_dimension_numbers<[1], [0], [0], [1], [0, 0, 1, 1], [], []>} : vector<16x8xf32>, vector<8x8xf32>, vector<16x8xf32> -> vector<16x8xf32>
    %87 = tpu.concatenate %32, %50, %68, %86 in 1 : vector<16x8xf32>, vector<16x8xf32>, vector<16x8xf32>, vector<16x8xf32> -> vector<16x32xf32>
    %c0_34 = arith.constant 0 : index
    %c0_35 = arith.constant 0 : index
    %88 = vector.load %arg7[%c0_34, %c0_35] : memref<32x32xf32, #tpu.memory_space<vmem>>, vector<32x32xf32>
    %cst_36 = arith.constant dense<0.000000e+00> : vector<16x32xf32>
    %89 = tpu.matmul %87, %88, %cst_36 {dimension_numbers = #tpu.dot_dimension_numbers<[1], [0], [0], [1], [0, 0, 1, 1], [], []>} : vector<16x32xf32>, vector<32x32xf32>, vector<16x32xf32> -> vector<16x32xf32>
    %c0_37 = arith.constant 0 : index
    %c0_38 = arith.constant 0 : index
    %90 = vector.load %arg8[%c0_37, %c0_38] : memref<1x32xf32, #tpu.memory_space<vmem>>, vector<1x32xf32>
    %91 = vector.broadcast %90 : vector<1x32xf32> to vector<16x32xf32>
    %92 = arith.addf %89, %91 : vector<16x32xf32>
    %c0_39 = arith.constant 0 : index
    %c0_40 = arith.constant 0 : index
    %c0_41 = arith.constant 0 : index
    %93 = vector.load %arg9[%c0_39, %c0_40, %c0_41] : memref<1x16x32xf32, #tpu.memory_space<vmem>>, vector<1x16x32xf32>
    %94 = vector.shape_cast %93 : vector<1x16x32xf32> to vector<16x32xf32>
    %95 = vector.shape_cast %92 : vector<16x32xf32> to vector<1x16x32xf32>
    tpu.vector_store %arg9[%c0_39, %c0_40, %c0_41], %95 {strides = array<i32>} : memref<1x16x32xf32, #tpu.memory_space<vmem>>, vector<1x16x32xf32>,
    %cst_42 = arith.constant 2.500000e-01 : f32
    %96 = vector.broadcast %cst_42 : f32 to vector<16x8xf32>
    %97 = arith.mulf %85, %96 : vector<16x8xf32>
    %c0_43 = arith.constant 0 : index
    %c0_44 = arith.constant 0 : index
    %c0_45 = arith.constant 0 : index
    %98 = vector.load %arg10[%c0_43, %c0_44, %c0_45] : memref<1x16x8xf32, #tpu.memory_space<vmem>>, vector<1x16x8xf32>
    %99 = vector.shape_cast %98 : vector<1x16x8xf32> to vector<16x8xf32>
    %100 = vector.shape_cast %97 : vector<16x8xf32> to vector<1x16x8xf32>
    tpu.vector_store %arg10[%c0_43, %c0_44, %c0_45], %100 {strides = array<i32>} : memref<1x16x8xf32, #tpu.memory_space<vmem>>, vector<1x16x8xf32>,
    return
  }
  func.func @transform_0(%arg0: i32) -> (i32, i32, i32) {
    %c0_i32 = arith.constant 0 : i32
    %c0_i32_0 = arith.constant 0 : i32
    %c0_i32_1 = arith.constant 0 : i32
    return %arg0, %c0_i32, %c0_i32_0 : i32, i32, i32
  }
  func.func @transform_1(%arg0: i32) -> (i32, i32, i32) {
    %c0_i32 = arith.constant 0 : i32
    %c0_i32_0 = arith.constant 0 : i32
    %c0_i32_1 = arith.constant 0 : i32
    return %arg0, %c0_i32, %c0_i32_0 : i32, i32, i32
  }
  func.func @transform_2(%arg0: i32) -> (i32, i32) {
    %c0_i32 = arith.constant 0 : i32
    %c0_i32_0 = arith.constant 0 : i32
    %c0_i32_1 = arith.constant 0 : i32
    return %c0_i32, %c0_i32_0 : i32, i32
  }
  func.func @transform_3(%arg0: i32) -> (i32, i32) {
    %c0_i32 = arith.constant 0 : i32
    %c0_i32_0 = arith.constant 0 : i32
    %c0_i32_1 = arith.constant 0 : i32
    return %c0_i32, %c0_i32_0 : i32, i32
  }
  func.func @transform_4(%arg0: i32) -> (i32, i32) {
    %c0_i32 = arith.constant 0 : i32
    %c0_i32_0 = arith.constant 0 : i32
    %c0_i32_1 = arith.constant 0 : i32
    return %c0_i32, %c0_i32_0 : i32, i32
  }
  func.func @transform_5(%arg0: i32) -> (i32, i32) {
    %c0_i32 = arith.constant 0 : i32
    %c0_i32_0 = arith.constant 0 : i32
    %c0_i32_1 = arith.constant 0 : i32
    return %c0_i32, %c0_i32_0 : i32, i32
  }
  func.func @transform_6(%arg0: i32) -> (i32, i32) {
    %c0_i32 = arith.constant 0 : i32
    %c0_i32_0 = arith.constant 0 : i32
    %c0_i32_1 = arith.constant 0 : i32
    return %c0_i32, %c0_i32_0 : i32, i32
  }
  func.func @transform_7(%arg0: i32) -> (i32, i32) {
    %c0_i32 = arith.constant 0 : i32
    %c0_i32_0 = arith.constant 0 : i32
    %c0_i32_1 = arith.constant 0 : i32
    return %c0_i32, %c0_i32_0 : i32, i32
  }
  func.func @transform_8(%arg0: i32) -> (i32, i32, i32) {
    %c0_i32 = arith.constant 0 : i32
    %c0_i32_0 = arith.constant 0 : i32
    %c0_i32_1 = arith.constant 0 : i32
    return %arg0, %c0_i32, %c0_i32_0 : i32, i32, i32
  }
  func.func @transform_9(%arg0: i32) -> (i32, i32, i32) {
    %c0_i32 = arith.constant 0 : i32
    %c0_i32_0 = arith.constant 0 : i32
    %c0_i32_1 = arith.constant 0 : i32
    return %arg0, %c0_i32, %c0_i32_0 : i32, i32, i32
  }
}

</mosaic_0001>

<bundles_post_ra>
// kernel: cross_attention.1
= control target key start
LH: loop header
LB: loop body
LE: loop exit
PB: predicated region body
PF: predicated region fallthrough
CT: control target
= control target key end

     0   :  { %15 = vsyncpa [#allocation3], 0  ;;  %s1495_s0 = inlined_call_operand.vmem [shape: f32[2,16,32], index: 0, kind: input, shape index: {}]   ;;  %s1496_s1 = inlined_call_operand.vmem [shape: f32[2,8,64], index: 1, kind: input, shape index: {}]   ;;  %s1497_s2 = inlined_call_operand.vmem [shape: f32[32,32], index: 2, kind: input, shape index: {}]   ;;  %s1498_s3 = inlined_call_operand.vmem [shape: f32[1,32], index: 3, kind: input, shape index: {}]   ;;  %s1499_s4 = inlined_call_operand.vmem [shape: f32[64,64], index: 4, kind: input, shape index: {}]   ;;  %s1500_s5 = inlined_call_operand.vmem [shape: f32[1,64], index: 5, kind: input, shape index: {}]   ;;  %s1501_s6 = inlined_call_operand.vmem [shape: f32[32,32], index: 6, kind: input, shape index: {}]   ;;  %s1502_s7 = inlined_call_operand.vmem [shape: f32[1,32], index: 7, kind: input, shape index: {}]   ;;  %s1503_s8 = inlined_call_operand.hbm [shape: f32[2,16,32], index: 8, kind: output, shape index: {0}]   ;;  %s1504_s9 = inlined_call_operand.vmem [shape: f32[2,16,8], index: 9, kind: output, shape index: {1}]  }
   0x1   :  { %17 = vsyncpa [#allocation3 + $0x1], 0  ;;  %s1258_s30 = smov 0   ;;  %s1260_s10 = smov 0  }
   0x2   :  { %s1262_s11 = smov 0   ;;  %s1264_s12 = smov 0  }
   0x3 LB: > { %s1279_s13 = sadd.s32 4294967295, %s1195_s12   ;;  %s1004_s14 = sadd.s32 4294967294, %s1195_s12   ;;  %s1195_s12 = sphi %s1264_s12, %s1512_s12   ;;  %s1191_s11 = sphi %s1262_s11, %s1511_s11   ;;  %s1187_s10 = sphi %s1260_s10, %s1510_s10   ;;  %s1183_s30 = sphi %s1258_s30, %s1509_s30  }
   0x4   : > { %s1283_s15 = sadd.s32 1, %s1195_s12   ;;  %s208_s16 = sadd.s32 1, %s1191_s11 }
   0x5   : > { %s205_s17 = ssub.s32 %s1195_s12, %s1283_s15  ;;  %p218_p0 = scmp.ne.s32.totalorder %s1191_s11, %s1187_s10 }
   0x6   : > { %p206_p1 = scmp.eq.s32.totalorder %s205_s17, 0  ;;  %p219_p2 = scmp.eq.s32.totalorder %s1279_s13, 1 }
   0x7   : > { %p224_p3 = scmp.ne.s32.totalorder %s1187_s10, %s1183_s30  ;;  %p225_p4 = scmp.eq.s32.totalorder %s1004_s14, 1 }
   0x8   : > { %s1294_s18 = scalar_select %p206_p1, %s1191_s11, %s208_s16  }
   0x9   : > { %p1296_p5 = por %p219_p2, %p218_p0  ;;  %p1300_p6 = por %p225_p4, %p224_p3 }
   0xa   : > { %p1007_p7 = scmp.ge.s32.totalorder %s1195_s12, 1  ;;  %p302_p8 = scmp.lt.s32.totalorder %s1195_s12, 3 }
   0xc   : > { %p303_p9 = pnand %p1007_p7, %p302_p8 }
   0xd   : > { %p347_p10 = scmp.lt.s32.totalorder (!%p303_p9), %s1279_s13, 1  ;;  %s1198_s29 = smov (!%p303_p9), 120  }
   0xe   : > { %306 = sbr.rel (%p303_p9) target bundleno = 1373 (0x55d), region = 52  ;;  %s1199_s16 = smov (!%p303_p9), 104  }
   0xf   : > { %s1201_s17 = smov (!%p303_p9), 88   ;;  %s1202_s22 = smov (!%p303_p9), 80  }
  0x10   : > { %s1203_s24 = smov (!%p303_p9), 72  }
  0x13   : > { %v367_v0 = vld [vmem:[%s1497_s2 + $0x18] sm:$0xff]  ;;  %v366_v1 = vld [vmem:[%s1497_s2 + $0x10] sm:$0xff]  ;;  %v365_v2 = vld [vmem:[%s1497_s2 + $0x8] sm:$0xff]  ;;  %s1317_s27 = scalar_select %p347_p10, %s1279_s13, 1  ;;  %vm372_vm0 = vcmask 261120   ;;  %vm414_vm1 = vcmask 523264  }
  0x14   : > { %391 = vmatpush.msra.mxu1 %v367_v0  ;;  %v364_v3 = vld [vmem:[%s1497_s2] sm:$0xff]  ;;  %v409_v5 = vld [vmem:[%s1499_s4 + $0x38] sm:$0xff]  ;;  %v408_v6 = vld [vmem:[%s1499_s4 + $0x30] sm:$0xff]  ;;  %vm438_vm2 = vcmask 64512   ;;  %vm832_vm3 = vcmask 130048   ;;  %vm835_vm4 = vcmask 195584  }
  0x15   : > { %s1044_s14 = sshll.u32 %s1317_s27, 4  ;;  %v407_v7 = vld [vmem:[%s1499_s4 + $0x28] sm:$0xff]  ;;  %v406_v8 = vld [vmem:[%s1499_s4 + $0x20] sm:$0xff]  ;;  %v405_v10 = vld [vmem:[%s1499_s4 + $0x18] sm:$0xff]  ;;  %s1011_s23 = sshll.u32 %s1317_s27, 3 }
  0x16   : > { %392 = vmatpush.msra.mxu1 %v366_v1  ;;  %s351_s21 = scalar_lea.vmem %s1495_s0, %s1044_s14  ;;  %v404_v11 = vld [vmem:[%s1499_s4 + $0x10] sm:$0xff]  ;;  %v403_v12 = vld [vmem:[%s1499_s4 + $0x8] sm:$0xff]  ;;  %v402_v13 = vld [vmem:[%s1499_s4] sm:$0xff]  ;;  %s360_s28 = scalar_lea.vmem %s1504_s9, %s1044_s14 }
  0x17   : > { %v361_v4 = vld [vmem:[%s351_s21] sm:$0xff]  ;;  %v362_v9 = vld [vmem:[%s351_s21 + $0x8] sm:$0xff]  ;;  %s355_s21 = scalar_lea.vmem %s1496_s1, %s1011_s23  ;;  %s1197_s23 = smov 96  }
  0x18   : > { %393 = vmatpush.msra.mxu1 %v365_v2  ;;  %v363_v14 = vld [vmem:[%s355_s21] sm:$0xff]  ;;  %s1200_s21 = smov 112   ;;  %s1505_s27 = smov 8  }
  0x19   : > { %v1099_v17 = vld [vmem:[%s1500_s5] ss:$0 sm:$0xff] }
  0x1a   : > { %394 = vmatpush.msra.mxu1 %v364_v3  ;;  %v1098_v18 = vld [vmem:[%s1498_s3] ss:$0 sm:$0xff] }
  0x1b   : > { %1014 = vmatmul.msk.f32.vlgmr.msra.gmra.mxu1 %vm372_vm0, %v361_v4 }
  0x1c   : > { %426 = vmatpush.msrb.mxu1 %v409_v5 }
  0x1e   : > { %427 = vmatpush.msrb.mxu1 %v408_v6 }
  0x20   : > { %428 = vmatpush.msrb.mxu1 %v407_v7 }
  0x22   : > { %429 = vmatpush.msrb.mxu1 %v406_v8 }
  0x23   : > { %1015 = vmatmul.msk.f32.gmra.mxu1 %vm372_vm0, %v362_v9 }
  0x24   : > { %430 = vmatpush.msrb.mxu1 %v405_v10 }
  0x26   : > { %431 = vmatpush.msrb.mxu1 %v404_v11 }
  0x28   : > { %432 = vmatpush.msrb.mxu1 %v403_v12 }
  0x2a   : > { %433 = vmatpush.msrb.mxu1 %v402_v13 }
  0x2b   : > { %1016 = vmatmul.msk.f32.vlgmr.msrb.gmra.mxu1 %vm414_vm1, %v363_v14 }
  0x98   : > { %v396_v15 = vpop.f32.mrf.mxu1 }
  0x99   : > { %v397_v21 = vadd.f32 %v1098_v18, %v396_v15 }
  0xa0   : > { %v399_v16 = vpop.f32.mrf.mxu1 }
  0xa1   : > { %v400_v22 = vadd.f32 %v1098_v18, %v399_v16 }
  0xa8   : > { %v435_v19 = vpop.f32.mrf.mxu1 }
  0xa9   : > { %v1364_v20 = vadd.f32 %v1099_v17, %v435_v19 }
  0xab   : > { %495 = vrot.lane.b32.xlu2 %v1364_v20, %s1197_s23  ;;  %1017 = vmatpush.xpose.msk.msra.mxu0 %vm438_vm2, %v1364_v20 }
  0xac   : > { %1047 = vmatpush.xpose.msk.msra.mxu2 %vm438_vm2, %v1364_v20 }
  0xae   : > { %1018 = vmatmul.msk.f32.vlgmr.msra.gmra.mxu0 %vm438_vm2, %v397_v21 }
  0xaf   : > { %1019 = vmatmul.msk.f32.vlgmr.msra.gmra.mxu2 %vm438_vm2, %v400_v22 }
  0xb3   : > { %531 = vrot.lane.b32.xlu2 %v1364_v20, %s1198_s29 }
  0xbb   : > { %717 = vrot.lane.b32.xlu2 %v1364_v20, %s1199_s16 }
  0xc3   : > { %713 = vrot.lane.b32.xlu2 %v397_v21, %s1199_s16 }
  0xcb   : > { %624 = vrot.lane.b32.xlu2 %v1364_v20, %s1200_s21 }
  0xd3   : > { %620 = vrot.lane.b32.xlu2 %v397_v21, %s1200_s21 }
 0x105   : > { %v496_v23 = vpop.permute.xlu2 %495 }
 0x106   : > { %519 = vmatpush.msra.mxu3 %v496_v23 }
 0x10d   : > { %v532_v24 = vpop.permute.xlu2 %531 }
 0x10e   : > { %1022 = vmatpush.xpose.msk.msrb.mxu3 %vm438_vm2, %v532_v24 }
 0x115   : > { %v718_v25 = vpop.permute.xlu2 %717 }
 0x11d   : > { %v714_v26 = vpop.permute.xlu2 %713 }
 0x125   : > { %v625_v27 = vpop.permute.xlu2 %624 }
 0x126   : > { %1027 = vmatpush.xpose.msk.msrb.mxu0 %vm438_vm2, %v625_v27 }
 0x12b   : > { %v465_v28 = vpop.f32.mrf.mxu0 }
 0x12c   : > { %v471_v29 = vmul.f32 0.35355338, %v465_v28 }
 0x12d   : > { %v621_v30 = vpop.permute.xlu2 %620 }
 0x12e   : > { %1028 = vmatmul.msk.f32.vlgmr.msrb.gmra.mxu0 %vm438_vm2, %v621_v30  ;;  %v473_v31 = vsel %vm438_vm2, %v471_v29, -inf }
 0x12f   : > { %474 = vmax.xlane.f32.xlu0 %v473_v31 }
 0x132   : > { %v468_v32 = vpop.f32.mrf.mxu2 }
 0x133   : > { %v472_v33 = vmul.f32 0.35355338, %v468_v32 }
 0x135   : > { %v476_v34 = vsel %vm438_vm2, %v472_v33, -inf }
 0x137   : > { %477 = vmax.xlane.f32.xlu0 %v476_v34 }
 0x14b   : > { %527 = vrot.lane.b32.xlu0 %v397_v21, %s1198_s29 }
 0x153   : > { %715 = vrot.lane.b32.xlu0 %v400_v22, %s1199_s16 }
 0x1a2   : > { %v475_v35 = vpop.xlane.xlu0 %474 }
 0x1a3   : > { %v479_v36 = vsub.f32 %v471_v29, %v475_v35 }
 0x1a5   : > { %v481_v37 = vmul.f32 1.442695, %v479_v36 }
 0x1a7   : > { %1101 = vpow2.f32 %v481_v37 }
 0x1aa   : > { %v478_v38 = vpop.xlane.xlu0 %477 }
 0x1ab   : > { %v480_v39 = vsub.f32 %v472_v33, %v478_v38  ;;  %v649_v60 = vpop.f32.mrf.mxu0 }
 0x1ac   : > { %v655_v61 = vmul.f32 0.35355338, %v649_v60 }
 0x1ad   : > { %v1102_v40 = vpop.eup %1101  ;;  %v483_v41 = vmul.f32 1.442695, %v480_v39 }
 0x1ae   : > { %v485_v42 = vsel %vm438_vm2, %v1102_v40, 0.0  ;;  %v657_v0 = vsel %vm438_vm2, %v655_v61, -inf }
 0x1af   : > { %1103 = vpow2.f32 %v483_v41  ;;  %486 = vadd.xlane.f32.xlu1 %v485_v42 }
 0x1b5   : > { %v1104_v43 = vpop.eup %1103 }
 0x1b6   : > { %v488_v44 = vsel %vm438_vm2, %v1104_v43, 0.0 }
 0x1b7   : > { %489 = vadd.xlane.f32.xlu1 %v488_v44 }
 0x1bd   : > { %v528_v51 = vpop.permute.xlu0 %527 }
 0x1c5   : > { %v716_v54 = vpop.permute.xlu0 %715 }
 0x1d0   : > { %529 = vrot.lane.b32.xlu1 %v400_v22, %s1198_s29 }
 0x1d8   : > { %622 = vrot.lane.b32.xlu1 %v400_v22, %s1200_s21  ;;  %s1205_s21 = smov 16  }
 0x222   : > { %v487_v45 = vpop.xlane.xlu1 %486 }
 0x223   : > { %1105 = vrcp.f32 %v487_v45 }
 0x229   : > { %v1106_v46 = vpop.eup %1105 }
 0x22a   : > { %v490_v47 = vpop.xlane.xlu1 %489  ;;  %v1389_v48 = vmul.f32 %v1106_v46, %v1102_v40 }
 0x22b   : > { %1107 = vrcp.f32 %v490_v47 }
 0x22c   : > { %1020 = vmatmul.msk.f32.vlgmr.msra.gmra.mxu3 %vm438_vm2, %v1389_v48 }
 0x22d   : > { %1032 = vmatpush.xpose.msk.msra.mxu3 %vm438_vm2, %v718_v25 }
 0x231   : > { %v1108_v49 = vpop.eup %1107 }
 0x232   : > { %v1394_v50 = vmul.f32 %v1108_v49, %v1104_v43 }
 0x234   : > { %1021 = vmatmul.msk.f32.gmra.mxu3 %vm438_vm2, %v1394_v50 }
 0x23c   : > { %1023 = vmatmul.msk.f32.vlgmr.msrb.gmra.mxu3 %vm438_vm2, %v528_v51 }
 0x242   : > { %v530_v52 = vpop.permute.xlu1 %529 }
 0x244   : > { %1024 = vmatmul.msk.f32.gmra.mxu3 %vm438_vm2, %v530_v52 }
 0x24a   : > { %v623_v53 = vpop.permute.xlu1 %622 }
 0x24b   : > { %1029 = vmatmul.msk.f32.gmra.mxu0 %vm438_vm2, %v623_v53 }
 0x24c   : > { %1033 = vmatmul.msk.f32.vlgmr.msra.gmra.mxu3 %vm438_vm2, %v714_v26 }
 0x254   : > { %1034 = vmatmul.msk.f32.gmra.mxu3 %vm438_vm2, %v716_v54 }
 0x2af   : > { %v1403_v55 = vpop.f32.mrf.mxu3 }
 0x2b7   : > { %v1405_v56 = vpop.f32.mrf.mxu3 }
 0x2bf   : > { %v556_v57 = vpop.f32.mrf.mxu3 }
 0x2c0   : > { %v562_v58 = vmul.f32 0.35355338, %v556_v57 }
 0x2c2   : > { %v564_v59 = vsel %vm438_vm2, %v562_v58, -inf }
 0x2c3   : > { %565 = vmax.xlane.f32.xlu0 %v564_v59 }
 0x2c7   : > { %v559_v62 = vpop.f32.mrf.mxu3 }
 0x2c8   : > { %v563_v63 = vmul.f32 0.35355338, %v559_v62  ;;  %v652_v5 = vpop.f32.mrf.mxu0 }
 0x2c9   : > { %v656_v6 = vmul.f32 0.35355338, %v652_v5 }
 0x2ca   : > { %v567_v1 = vsel %vm438_vm2, %v563_v63, -inf }
 0x2cb   : > { %658 = vmax.xlane.f32.xlu0 %v657_v0  ;;  %568 = vmax.xlane.f32.xlu2 %v567_v1  ;;  %v660_v9 = vsel %vm438_vm2, %v656_v6, -inf }
 0x2cf   : > { %v742_v2 = vpop.f32.mrf.mxu3 }
 0x2d0   : > { %v748_v3 = vmul.f32 0.35355338, %v742_v2 }
 0x2d2   : > { %v750_v4 = vsel %vm438_vm2, %v748_v3, -inf }
 0x2d3   : > { %751 = vmax.xlane.f32.xlu1 %v750_v4 }
 0x2d7   : > { %v745_v7 = vpop.f32.mrf.mxu3 }
 0x2d8   : > { %v749_v8 = vmul.f32 0.35355338, %v745_v7 }
 0x2da   : > { %v753_v10 = vsel %vm438_vm2, %v749_v8, -inf }
 0x2db   : > { %661 = vmax.xlane.f32.xlu1 %v660_v9  ;;  %754 = vmax.xlane.f32.xlu2 %v753_v10  ;;  %v841_v10 = vld [vmem:[%s1501_s6 + $0x18] sm:$0xff] }
 0x2dc   : > { %864 = vmatpush.msra.mxu0 %v841_v10 }
 0x2f4   : > { %588 = vrot.lane.b32.xlu1 %v1364_v20, %s1201_s17  ;;  %s1206_s17 = smov 24  }
 0x2fc   : > { %681 = vrot.lane.b32.xlu1 %v1364_v20, %s1202_s22 }
 0x336   : > { %v566_v11 = vpop.xlane.xlu0 %565 }
 0x337   : > { %v570_v12 = vsub.f32 %v562_v58, %v566_v11 }
 0x339   : > { %v572_v13 = vmul.f32 1.442695, %v570_v12 }
 0x33b   : > { %1109 = vpow2.f32 %v572_v13 }
 0x33e   : > { %v659_v14 = vpop.xlane.xlu0 %658  ;;  %v569_v15 = vpop.xlane.xlu2 %568 }
 0x33f   : > { %v663_v16 = vsub.f32 %v655_v61, %v659_v14  ;;  %v571_v19 = vsub.f32 %v563_v63, %v569_v15 }
 0x341   : > { %v1110_v17 = vpop.eup %1109  ;;  %v665_v18 = vmul.f32 1.442695, %v663_v16  ;;  %v574_v22 = vmul.f32 1.442695, %v571_v19  ;;  %v839_v16 = vld [vmem:[%s1501_s6 + $0x8] sm:$0xff] }
 0x342   : > { %v576_v21 = vsel %vm438_vm2, %v1110_v17, 0.0 }
 0x343   : > { %577 = vadd.xlane.f32.xlu0 %v576_v21  ;;  %1111 = vpow2.f32 %v665_v18 }
 0x344   : > { %1113 = vpow2.f32 %v574_v22 }
 0x346   : > { %v752_v23 = vpop.xlane.xlu1 %751 }
 0x347   : > { %v756_v24 = vsub.f32 %v748_v3, %v752_v23 }
 0x349   : > { %v758_v25 = vmul.f32 1.442695, %v756_v24  ;;  %v1112_v26 = vpop.eup %1111 }
 0x34a   : > { %v669_v27 = vsel %vm438_vm2, %v1112_v26, 0.0  ;;  %v1114_v31 = vpop.eup %1113 }
 0x34b   : > { %1115 = vpow2.f32 %v758_v25  ;;  %670 = vadd.xlane.f32.xlu2 %v669_v27  ;;  %v579_v36 = vsel %vm438_vm2, %v1114_v31, 0.0 }
 0x34e   : > { %v755_v28 = vpop.xlane.xlu2 %754  ;;  %v662_v29 = vpop.xlane.xlu1 %661 }
 0x34f   : > { %v757_v30 = vsub.f32 %v749_v8, %v755_v28  ;;  %v664_v34 = vsub.f32 %v656_v6, %v662_v29 }
 0x351   : > { %v1116_v32 = vpop.eup %1115  ;;  %v760_v33 = vmul.f32 1.442695, %v757_v30  ;;  %v667_v37 = vmul.f32 1.442695, %v664_v34 }
 0x352   : > { %v762_v35 = vsel %vm438_vm2, %v1116_v32, 0.0 }
 0x353   : > { %763 = vadd.xlane.f32.xlu0 %v762_v35  ;;  %1117 = vpow2.f32 %v760_v33  ;;  %580 = vadd.xlane.f32.xlu2 %v579_v36 }
 0x354   : > { %1119 = vpow2.f32 %v667_v37 }
 0x359   : > { %v1118_v38 = vpop.eup %1117 }
 0x35a   : > { %v765_v39 = vsel %vm438_vm2, %v1118_v38, 0.0  ;;  %v1120_v40 = vpop.eup %1119 }
 0x35b   : > { %766 = vadd.xlane.f32.xlu0 %v765_v39  ;;  %v672_v41 = vsel %vm438_vm2, %v1120_v40, 0.0 }
 0x363   : > { %673 = vadd.xlane.f32.xlu0 %v672_v41 }
 0x366   : > { %v589_v42 = vpop.permute.xlu1 %588 }
 0x367   : > { %612 = vmatpush.msrb.mxu2 %v589_v42 }
 0x36b   : > { %774 = vrot.lane.b32.xlu2 %v1364_v20, %s1203_s24 }
 0x36e   : > { %v682_v43 = vpop.permute.xlu1 %681 }
 0x36f   : > { %705 = vmatpush.msra.mxu1 %v682_v43 }
 0x3b6   : > { %v578_v44 = vpop.xlane.xlu0 %577 }
 0x3b7   : > { %1121 = vrcp.f32 %v578_v44 }
 0x3bd   : > { %v1122_v45 = vpop.eup %1121 }
 0x3be   : > { %v584_v46 = vmul.f32 %v1122_v45, %v1110_v17  ;;  %v671_v47 = vpop.xlane.xlu2 %670  ;;  %v838_v17 = vld [vmem:[%s1501_s6] sm:$0xff] }
 0x3bf   : > { %1123 = vrcp.f32 %v671_v47 }
 0x3c0   : > { %1025 = vmatmul.msk.f32.vlgmr.msrb.gmra.mxu2 %vm438_vm2, %v584_v46  ;;  %v586_v20 = vadd.f32 %v584_v46, %v1389_v48 }
 0x3c5   : > { %v1124_v49 = vpop.eup %1123 }
 0x3c6   : > { %v764_v51 = vpop.xlane.xlu0 %763  ;;  %v677_v52 = vmul.f32 %v1124_v49, %v1112_v26  ;;  %v581_v53 = vpop.xlane.xlu2 %580 }
 0x3c7   : > { %1125 = vrcp.f32 %v764_v51 }
 0x3c8   : > { %1127 = vrcp.f32 %v581_v53  ;;  %1030 = vmatmul.msk.f32.vlgmr.msra.gmra.mxu1 %vm438_vm2, %v677_v52  ;;  %v679_v58 = vadd.f32 %v677_v52, %v586_v20 }
 0x3cd   : > { %v1126_v54 = vpop.eup %1125 }
 0x3ce   : > { %v1128_v57 = vpop.eup %1127  ;;  %v770_v59 = vmul.f32 %v1126_v54, %v1116_v32  ;;  %v775_v60 = vpop.permute.xlu2 %774 }
 0x3cf   : > { %v767_v61 = vpop.xlane.xlu0 %766  ;;  %v585_v62 = vmul.f32 %v1128_v57, %v1114_v31  ;;  %798 = vmatpush.msra.mxu2 %v775_v60 }
 0x3d0   : > { %v772_v63 = vadd.f32 %v770_v59, %v679_v58  ;;  %1129 = vrcp.f32 %v767_v61 }
 0x3d1   : > { %1026 = vmatmul.msk.f32.gmra.mxu2 %vm438_vm2, %v585_v62  ;;  %v587_v3 = vadd.f32 %v585_v62, %v1394_v50  ;;  %v840_v50 = vld [vmem:[%s1501_s6 + $0x10] sm:$0xff] }
 0x3d2   : > { %v877_v0 = vmul.f32 0.25, %v772_v63  ;;  %865 = vmatpush.msra.mxu0 %v840_v50 }
 0x3d4   : > { %879 = vst.msk [vmem:[%s360_s28] sm:$0xff] %vm438_vm2, %v877_v0  ;;  %866 = vmatpush.msra.mxu0 %v839_v16 }
 0x3d6   : > { %v1130_v1 = vpop.eup %1129  ;;  %867 = vmatpush.msra.mxu0 %v838_v17 }
 0x3d7   : > { %v674_v48 = vpop.xlane.xlu0 %673  ;;  %v771_v5 = vmul.f32 %v1130_v1, %v1118_v38 }
 0x3d8   : > { %1131 = vrcp.f32 %v674_v48 }
 0x3d9   : > { %1035 = vmatmul.msk.f32.vlgmr.msra.gmra.mxu2 %vm438_vm2, %v770_v59 }
 0x3de   : > { %v1132_v2 = vpop.eup %1131 }
 0x3df   : > { %v678_v4 = vmul.f32 %v1132_v2, %v1120_v40 }
 0x3e1   : > { %v680_v6 = vadd.f32 %v678_v4, %v587_v3  ;;  %1031 = vmatmul.msk.f32.gmra.mxu1 %vm438_vm2, %v678_v4  ;;  %1036 = vmatmul.msk.f32.gmra.mxu2 %vm438_vm2, %v771_v5 }
 0x3e3   : > { %v773_v7 = vadd.f32 %v771_v5, %v680_v6 }
 0x3e5   : > { %v878_v8 = vmul.f32 0.25, %v773_v7 }
 0x3e7   : > { %880 = vst.msk [vmem:[%s360_s28 + $0x8] sm:$0xff] %vm438_vm2, %v878_v8  ;;  %s337_s28 = sand.u32 1, %s1187_s10  }
 0x3e8   : > { %s1008_s14 = sshll.u32 %s337_s28, 4  ;;  %s882_s23 = scalar_lea.sflag [#allocation3], %s337_s28 }
 0x3e9   : > { %s339_s16 = scalar_lea.vmem [#allocation2], %s1008_s14 }
 0x3ea   : > { %s899_s25 = sshll.u32 %s339_s16, 4  ;;  %s900_s25 = int_to_ptr.vmem [resolvable:$true] %s899_s25 }
 0x443   : > { %v614_v9 = vpop.f32.mrf.mxu2 }
 0x444   : > { %808 = vrot.lane.b32.xlu0 %v614_v9, %s1505_s27 }
 0x445   : > { %v707_v11 = vpop.f32.mrf.mxu1 }
 0x446   : > { %816 = vrot.lane.b32.xlu1 %v707_v11, %s1205_s21 }
 0x454   : > { %v617_v12 = vpop.f32.mrf.mxu2 }
 0x455   : > { %810 = vrot.lane.b32.xlu1 %v617_v12, %s1505_s27 }
 0x45c   : > { %v800_v13 = vpop.f32.mrf.mxu2 }
 0x45d   : > { %824 = vrot.lane.b32.xlu2 %v800_v13, %s1206_s17 }
 0x45e   : > { %v710_v14 = vpop.f32.mrf.mxu1 }
 0x464   : > { %v803_v15 = vpop.f32.mrf.mxu2 }
 0x465   : > { %826 = vrot.lane.b32.xlu0 %v803_v15, %s1206_s17  ;;  %818 = vrot.lane.b32.xlu2 %v710_v14, %s1205_s21  ;;  %s1046_s21 = sshll.u32 %s1279_s13, 4 }
 0x466   : > { %s898_s24 = scalar_lea.hbm %s1503_s8, %s1046_s21  ;;  %s1153_s21 = scalar_lea.hbm %s1503_s8, 32 }
 0x467   : > { %s901_s26 = sshll.u32 %s898_s24, 4  ;;  %s902_s26 = int_to_ptr.hbm [resolvable:$true] %s901_s26 }
 0x468   : > { %s1147_s29 = sshra.s32 %s902_s26, 4  ;;  %s1148_s29 = int_to_ptr.hbm [resolvable:$true] %s1147_s29 }
 0x469   : > { %s1149_s14 = scalar_lea.hbm %s1148_s29, 16  ;;  %p1154_p0 = scmp.lt.s32.totalorder %s1148_s29, %s1503_s8 }
 0x46a   : > { %p1150_p11 = scmp.ne.s32.totalorder %s1148_s29, %s1149_s14  ;;  %p1155_p1 = scmp.lt.s32.totalorder %s1153_s21, %s1149_s14 }
 0x46c   : > { %p1151_p12 = pnand %p1150_p11, %p1296_p5  ;;  %p1156_p2 = por %p1155_p1, %p1154_p0 }
 0x46e   : > { %p1152_p13 = pneg %p1151_p12 }
 0x470   : > { %p1157_p3 = pnand %p1156_p2, %p1152_p13 }
 0x4b6   : > { %v809_v18 = vpop.permute.xlu0 %808 }
 0x4b7   : > { %v830_v19 = vsel %vm438_vm2, %v1403_v55, %v809_v18  ;;  %v825_v22 = vpop.permute.xlu2 %824  ;;  %v1100_v55 = vld [vmem:[%s1502_s7] ss:$0 sm:$0xff] }
 0x4b8   : > { %v817_v21 = vpop.permute.xlu1 %816 }
 0x4b9   : > { %v833_v23 = vsel %vm832_vm3, %v830_v19, %v817_v21 }
 0x4ba   : > { %v836_v24 = vsel %vm835_vm4, %v833_v23, %v825_v22 }
 0x4bb   : > { %1037 = vmatmul.msk.f32.vlgmr.msra.gmra.mxu0 %vm372_vm0, %v836_v24 }
 0x4bf   : > { %v819_v27 = vpop.permute.xlu2 %818 }
 0x4c7   : > { %v811_v25 = vpop.permute.xlu1 %810 }
 0x4c8   : > { %v831_v26 = vsel %vm438_vm2, %v1405_v56, %v811_v25 }
 0x4c9   : > { %v834_v29 = vsel %vm832_vm3, %v831_v26, %v819_v27 }
 0x4d7   : > { %v827_v28 = vpop.permute.xlu0 %826 }
 0x4d8   : > { %v837_v30 = vsel %vm835_vm4, %v834_v29, %v827_v28 }
 0x4d9   : > { %1038 = vmatmul.msk.f32.gmra.mxu0 %vm372_vm0, %v837_v30 }
 0x538   : > { %v869_v31 = vpop.f32.mrf.mxu0 }
 0x539   : > { %v870_v32 = vadd.f32 %v1100_v55, %v869_v31 }
 0x53b   : > { %875 = vst.msk [vmem:[%s339_s16] sm:$0xff] %vm372_vm0, %v870_v32 }
 0x556   : > { %v872_v56 = vpop.f32.mrf.mxu0 }
 0x557   : > { %v873_v33 = vadd.f32 %v1100_v55, %v872_v56 }
 0x559   : > { %876 = vst.msk [vmem:[%s339_s16 + $0x8] sm:$0xff] %vm372_vm0, %v873_v33 }
 0x55a   : > { %1160 = shalt.err (!%p1157_p3)
}
 0x55b   : > { %s1207_s28 = smov 128   ;;  %s1508_s16 = smov 8  }
 0x55c   : > { %1048 = dma.vmem_to_hbm [thread:$0]  (%p1296_p5), %s900_s25, 256, %s902_s26, %s882_s23, %s1207_s28, %s1207_s28, %s1508_s16  }
 0x55d PF: > { %p1054_p4 = scmp.ge.s32.totalorder %s1195_s12, 2  ;;  %s919_s27 = sand.u32 1, %s1183_s30  }
 0x55e   : > { %s920_s24 = scalar_lea.sflag [#allocation3], %s919_s27 }
 0x55f   : > { %p1051_p7 = pnand %p1054_p4, %p1300_p6 }
 0x561   : > { %p1052_p8 = pneg %p1051_p7 }
 0x563   : > { %1178 = dma.done.wait (%p1052_p8), %s920_s24, 256  }
 0x564   : > { %1180 = vsyncadd (%p1052_p8), %s920_s24, 4294967040  ;;  %p20_p9 = scmp.ge.s32.totalorder %s1283_s15, 4   ;;  %s1509_s30 = smov %s1187_s10 }
 0x565   : > { %s1510_s10 = smov %s1191_s11  ;;  %s1511_s11 = smov %s1294_s18 }
 0x566   : > { %s1512_s12 = smov %s1283_s15  ;;  %22 = sbr.rel (!%p20_p9) target bundleno = 3 (0x3), region = 102 }
 0x56b   :  { %934 = vsyncpa [#allocation3], 1 }
 0x56c   :  { %936 = vsyncpa [#allocation3 + $0x1], 1 }

</bundles_post_ra>
